<compile_context>
chip_gen: v7x
topology: tpu7x:2x2x1
jax: 0.10.0
libtpu: 0.0.40
codegen_flags: <defaults>
</compile_context>

<pallas_src>
import jax
import jax.numpy as jnp
from jax.experimental import pallas as pl
from jax.experimental.pallas import tpu as pltpu

# Candidate lane-dense slab widths (all multiples of 128), largest first.
_LANE_CANDIDATES = (2048, 1024, 512, 256, 128)


def _gain_kernel(gain_ref, x_ref, o_ref):
    # gain is a single f32 scalar in SMEM; cast once to the tile dtype and do
    # the multiply natively on the VPU over a lane-dense (TM, W) tile, written
    # back as unmasked full-vreg stores.
    g = gain_ref[0].astype(x_ref.dtype)
    o_ref[...] = x_ref[...] * g


def _tpu_vmem_capacity_bytes():
    try:
        return int(pltpu.get_tpu_info().vmem_capacity_bytes)
    except Exception:
        return 64 << 20  # conservative (v7x-sized) default


def _tpu_num_tensorcores():
    try:
        info = pltpu.get_tpu_info()
        for name in ("num_cores", "tensorcores_per_chip", "num_tensorcores"):
            n = getattr(info, name, None)
            if n:
                return int(n)
    except Exception:
        pass
    return 1


def gain_forward(x, gain):
    """out = x * gain, with gain a scalar f32 parameter; x may be any shape."""
    orig_shape = x.shape
    total = x.size
    gain_f32 = jnp.asarray(gain, dtype=jnp.float32).reshape(())

    # Ragged / tiny sizes: a plain fused XLA multiply is already optimal
    # (exactly 1 HBM read + 1 write); padding + kernel + slice would be ~3x.
    if total == 0 or total % 128 != 0:
        return (x * gain_f32.astype(x.dtype)).reshape(orig_shape)

    # Lane-dense slab (m, w): largest w that divides the element count, so no
    # wrapper-side pad / slice passes are ever needed on this path.
    for w in _LANE_CANDIDATES:
        if total % w == 0:
            break
    m = total // w
    x2 = x.reshape(m, w)

    # ---- Tile size from a generation-aware VMEM budget -------------------
    dtype_bytes = jnp.dtype(x.dtype).itemsize
    vmem_cap = _tpu_vmem_capacity_bytes()
    pipeline_budget = max(int(vmem_cap * 0.45), 8 << 20)
    max_tile_bytes = pipeline_budget // 4          # 2 bufs x (in + out) tiles
    tm_cap = max((max_tile_bytes // (w * dtype_bytes)) // 8 * 8, 8)
    tm = m if m <= tm_cap else tm_cap              # full extent or 8-multiple
    num_blocks = pl.cdiv(m, tm)                    # partial last row block is
                                                   # masked by Pallas
    tile_bytes = tm * w * dtype_bytes
    vmem_limit = int(max(min(4 * tile_bytes + (2 << 20),
                             pipeline_budget + (2 << 20)),
                         8 << 20))

    # ---- Engage both TensorCores on multi-core chips (v7x) ---------------
    num_cores = _tpu_num_tensorcores()
    if num_cores > 1 and num_blocks >= num_cores and num_blocks % num_cores == 0:
        dim_sem = (pltpu.CORE_PARALLEL,)
    else:
        dim_sem = ("arbitrary",)

    gain_arr = gain_f32.reshape(1)

    out2 = pl.pallas_call(
        _gain_kernel,
        out_shape=jax.ShapeDtypeStruct((m, w), x.dtype),
        grid=(num_blocks,),
        in_specs=[
            pl.BlockSpec(memory_space=pltpu.MemorySpace.SMEM),  # gain scalar
            pl.BlockSpec((tm, w), lambda i: (i, 0)),            # x row tile
        ],
        out_specs=pl.BlockSpec((tm, w), lambda i: (i, 0)),
        compiler_params=pltpu.CompilerParams(
            dimension_semantics=dim_sem,
            vmem_limit_bytes=vmem_limit,
        ),
    )(gain_arr, x2)

    return out2.reshape(orig_shape)


def gain_forward_ref(x, gain):
    """Plain-JAX reference mirroring the PyTorch module."""
    return (x * jnp.asarray(gain, dtype=jnp.float32)).astype(x.dtype)


if __name__ == "__main__":
    key = jax.random.PRNGKey(0)
    x = jax.random.normal(key, (2, 4, 16, 16), dtype=jnp.float32)

    # Module's init value (gain = 0.0) ...
    gain0 = jnp.float32(0.0)
    out0 = jax.block_until_ready(gain_forward(x, gain0))
    ref0 = gain_forward_ref(x, gain0)
    assert out0.shape == ref0.shape and out0.dtype == ref0.dtype
    assert jnp.allclose(out0, ref0, atol=1e-6, rtol=1e-6), "mismatch (gain=0)"

    # ... and a non-trivial gain value (as after training updates).
    gain1 = jnp.float32(0.731)
    out1 = jax.block_until_ready(gain_forward(x, gain1))
    ref1 = gain_forward_ref(x, gain1)
    assert jnp.allclose(out1, ref1, atol=1e-6, rtol=1e-6), "mismatch (gain=0.731)"

    print("KERNEL_OK")
</pallas_src>

<mosaic_0001>
module attributes {stable_mosaic.version = 11 : i64} {
  func.func @_gain_kernel(%arg0: i32, %arg1: memref<1xf32, #tpu.memory_space<smem>>, %arg2: memref<1x2048xf32, #tpu.memory_space<vmem>>, %arg3: memref<1x2048xf32, #tpu.memory_space<vmem>>) attributes {dimension_semantics = [#tpu.dimension_semantics<arbitrary>], iteration_bounds = array<i64: 1>, scalar_prefetch = 0 : i64, scratch_operands = 0 : i64, tpu.core_type = #tpu.core_type<tc>, window_params = [{transform_indices = @transform_0, window_bounds = array<i64: 1>}, {transform_indices = @transform_1, window_bounds = array<i64: 1, 2048>}, {transform_indices = @transform_2, window_bounds = array<i64: 1, 2048>}]} {
    %c0 = arith.constant 0 : index
    %0 = memref.load %arg1[%c0] : memref<1xf32, #tpu.memory_space<smem>>
    %c0_0 = arith.constant 0 : index
    %c0_1 = arith.constant 0 : index
    %1 = vector.load %arg2[%c0_0, %c0_1] : memref<1x2048xf32, #tpu.memory_space<vmem>>, vector<1x2048xf32>
    %2 = vector.broadcast %0 : f32 to vector<1x2048xf32>
    %3 = arith.mulf %1, %2 : vector<1x2048xf32>
    %c0_2 = arith.constant 0 : index
    %c0_3 = arith.constant 0 : index
    %4 = vector.load %arg3[%c0_2, %c0_3] : memref<1x2048xf32, #tpu.memory_space<vmem>>, vector<1x2048xf32>
    tpu.vector_store %arg3[%c0_2, %c0_3], %3 {strides = array<i32>} : memref<1x2048xf32, #tpu.memory_space<vmem>>, vector<1x2048xf32>,
    return
  }
  func.func @transform_0(%arg0: i32) -> i32 {
    %c0_i32 = arith.constant 0 : i32
    %c0_i32_0 = arith.constant 0 : i32
    return %c0_i32 : i32
  }
  func.func @transform_1(%arg0: i32) -> (i32, i32) {
    %c0_i32 = arith.constant 0 : i32
    %c0_i32_0 = arith.constant 0 : i32
    return %arg0, %c0_i32 : i32, i32
  }
  func.func @transform_2(%arg0: i32) -> (i32, i32) {
    %c0_i32 = arith.constant 0 : i32
    %c0_i32_0 = arith.constant 0 : i32
    return %arg0, %c0_i32 : i32, i32
  }
}

</mosaic_0001>

<bundles_post_ra>
// kernel: tpu_custom_call.1
= control target key start
LH: loop header
LB: loop body
LE: loop exit
PB: predicated region body
PF: predicated region fallthrough
CT: control target
= control target key end

     0   :  { %8 = vsyncpa [#allocation4], 0  ;;  %s142_s0 = inlined_call_operand.<no memory space> [shape: f32[1], index: 0, kind: input, shape index: {}]   ;;  %s143_s1 = inlined_call_operand.hbm [shape: f32[1,2048], index: 1, kind: input, shape index: {}]   ;;  %s144_s2 = inlined_call_operand.hbm [shape: f32[1,2048], index: 2, kind: output, shape index: {}]  }
   0x1   :  { %9 = vsyncpa [#allocation5], 0  ;;  %s98_s9 = smov [#allocation3]   ;;  %s50_s13 = scalar_lea.hbm %s143_s1, 256 }
   0x2   :  { %s18_s10 = sshll.u32 %s98_s9, 4  ;;  %p51_p0 = scmp.ne.s32.totalorder %s143_s1, %s50_s13  ;;  %s19_s10 = int_to_ptr.vmem [resolvable:$true] %s18_s10 }
   0x3   :  { %p54_p1 = scmp.lt.u32.totalorder %s50_s13, %s143_s1 }
   0x5   :  { %p56_p2 = pnand %p54_p1, %p51_p0 }
   0x7   :  { %59 = shalt.err (!%p56_p2)
}
   0x8   :  { %s60_s18 = scalar_lea.vmem %s19_s10, 256  ;;  %p65_p4 = scmp.lt.s32.totalorder %s19_s10, %s19_s10 }
   0x9   :  { %p61_p3 = scmp.ne.s32.totalorder %s19_s10, %s60_s18  ;;  %p66_p5 = scmp.lt.s32.totalorder %s60_s18, %s60_s18 }
   0xb   :  { %p67_p6 = por %p66_p5, %p65_p4 }
   0xd   :  { %p68_p7 = pnand %p67_p6, %p61_p3 }
   0xf   :  { %71 = shalt.err (!%p68_p7)
}
  0x10   :  { %21 = dma.hbm_to_vmem [thread:$0]  %s143_s1, 256, %s19_s10, [#allocation4]  }
  0x11   :  { %94 = dma.done.wait [#allocation4], 256  }
  0x12   :  { %95 = vsyncadd [#allocation4], 4294967040  ;;  %v28_v0 = vstv %s142_s0  ;;  %s99_s23 = smov [#allocation6]   ;;  %v26_v1 = vld [vmem:[#allocation3] sm:$0xff]  ;;  %v27_v2 = vld [vmem:[#allocation3 + $0x8] sm:$0xff] }
  0x13   :  { %s39_s24 = sshll.u32 %s99_s23, 4  ;;  %v29_v3 = vmul.f32 %v28_v0, %v26_v1  ;;  %v30_v4 = vmul.f32 %v28_v0, %v27_v2  ;;  %s40_s24 = int_to_ptr.vmem [resolvable:$true] %s39_s24 }
  0x14   :  { %s72_s25 = scalar_lea.vmem %s40_s24, 256  ;;  %p77_p9 = scmp.lt.s32.totalorder %s40_s24, %s40_s24 }
  0x15   :  { %31 = vst [vmem:[#allocation6] sm:$0xff] %v29_v3  ;;  %32 = vst [vmem:[#allocation6 + $0x8] sm:$0xff] %v30_v4  ;;  %p73_p8 = scmp.ne.s32.totalorder %s40_s24, %s72_s25  ;;  %p78_p10 = scmp.lt.s32.totalorder %s72_s25, %s72_s25 }
  0x17   :  { %p79_p11 = por %p78_p10, %p77_p9 }
  0x19   :  { %p80_p12 = pnand %p79_p11, %p73_p8 }
  0x1b   :  { %83 = shalt.err (!%p80_p12)
}
  0x1c   :  { %s84_s0 = scalar_lea.hbm %s144_s2, 256 }
  0x1d   :  { %p85_p13 = scmp.ne.s32.totalorder %s144_s2, %s84_s0  ;;  %p88_p0 = scmp.lt.u32.totalorder %s84_s0, %s144_s2 }
  0x1f   :  { %p90_p1 = pnand %p88_p0, %p85_p13 }
  0x21   :  { %93 = shalt.err (!%p90_p1)
}
  0x22   :  { %42 = dma.vmem_to_hbm [thread:$0]  %s40_s24, 256, %s144_s2, [#allocation5]  }
  0x23   :  { %96 = dma.done.wait [#allocation5], 256  }
  0x24   :  { %97 = vsyncadd [#allocation5], 4294967040 }
  0x25   :  { %46 = vsyncpa [#allocation4], 1 }
  0x26   :  { %47 = vsyncpa [#allocation5], 1 }

</bundles_post_ra>
